<compile_context>
chip_gen: v6e
topology: v6e:2x2x1
jax: 0.10.0
libtpu: 0.0.40
codegen_flags: <defaults>
</compile_context>

<pallas_src>
import functools

import numpy as np
import jax
import jax.numpy as jnp
from jax.experimental import pallas as pl
from jax.experimental.pallas import tpu as pltpu

NEG_INF = float(np.finfo(np.float32).min)


def _location_attn_kernel(
    key_ref,      # (TB, kmax, key_dim)
    value_ref,    # (TB, kmax, value_dim)
    unfold_ref,   # (TB, kmax, 2K+1)      unfold of aw_prev (built in wrapper)
    qproj_ref,    # (TB, 1, attn_dim)     precomputed W_query @ query
    mask_ref,     # (TB, kmax) int32      1 = keep, 0 = NEG_INF fill
    wkT_ref,      # (key_dim, attn_dim)
    bk_ref,       # (1, attn_dim)
    M_ref,        # (2K+1, attn_dim)      = convT @ wcT (folded conv->attn projection)
    v_ref,        # (1, attn_dim)
    cv_ref,       # (TB, value_dim)
    aw_ref,       # (TB, kmax)
    *, sharpening_factor,
):
  tb, kmax, key_dim = key_ref.shape
  attn_dim = wkT_ref.shape[1]
  n_taps = M_ref.shape[0]

  # ---- key projection: one (TB*kmax, key_dim) @ (key_dim, attn_dim) MXU matmul ----
  k_flat = key_ref[...].reshape(tb * kmax, key_dim)
  kp = jnp.dot(k_flat, wkT_ref[...], preferred_element_type=jnp.float32) + bk_ref[...]

  # ---- folded location-conv projection: unfold @ (convT @ wcT) ----
  u_flat = unfold_ref[...].reshape(tb * kmax, n_taps)
  cp = jnp.dot(u_flat, M_ref[...], preferred_element_type=jnp.float32)

  # ---- additive (location-aware) pre-activation + tanh ----
  s = jnp.tanh((kp + cp).reshape(tb, kmax, attn_dim) + qproj_ref[...])  # (TB,kmax,attn)

  # ---- energy: VPU multiply + lane reduce (avoid 1-wide MXU output) ----
  e = jnp.sum(s * v_ref[...][None, :, :], axis=-1)                      # (TB, kmax)

  # ---- mask + softmax over kmax (lane axis -> lane-dense) ----
  e = jnp.where(mask_ref[...] == 0, NEG_INF, e)
  logits = e * sharpening_factor
  m = jnp.max(logits, axis=-1, keepdims=True)
  p = jnp.exp(logits - m)
  aw = p / jnp.sum(p, axis=-1, keepdims=True)                           # (TB, kmax)

  # ---- context vector: batched (1,kmax) @ (kmax,value_dim) contraction ----
  cv = jnp.einsum('bqk,bkd->bqd', aw.reshape(tb, 1, kmax), value_ref[...],
                  preferred_element_type=jnp.float32)                    # (TB,1,value_dim)

  aw_ref[...] = aw
  cv_ref[...] = cv[:, 0, :]


def location_attention(key, value, query, mask, aw_prev, params, *,
                       sharpening_factor=1.0, tile_b=8):
  """key:(B,kmax,key_dim) value:(B,kmax,value_dim) query:(B,1,query_dim)
     mask:(B,1,kmax) or (B,kmax)   aw_prev:(B,kmax,1)
     Returns cv:(B,1,value_dim), aw:(B,kmax,1)."""
  wkT, bk, wqT, wcT, convT, v = params
  B, kmax, key_dim = key.shape
  value_dim = value.shape[-1]
  attn_dim = wkT.shape[1]
  n_taps = convT.shape[0]
  K = (n_taps - 1) // 2

  # ---------------- wrapper-side algebraic folds ----------------
  M = (convT @ wcT).astype(jnp.float32)                        # (2K+1, attn_dim)
  q_proj = (query @ wqT).astype(jnp.float32)                   # (B, 1, attn_dim)
  v_row = v.reshape(1, attn_dim).astype(jnp.float32)           # (1, attn_dim)

  mask2d = mask
  if mask2d.ndim == 3:                                         # PyTorch (B, qmax=1, kmax)
    mask2d = mask2d[:, 0, :]
  mask2d = mask2d.astype(jnp.int32)                            # (B, kmax) lane-dense

  # unfold of aw_prev for the location conv (tiny; built host-side)
  awp = aw_prev[..., 0]                                        # (B, kmax)
  pad = jnp.pad(awp, ((0, 0), (K, K)))
  unfold = jnp.stack([pad[:, j:j + kmax] for j in range(n_taps)], axis=-1)  # (B,kmax,2K+1)
  unfold = unfold.astype(jnp.float32)

  # ---------------- pad batch to a multiple of tile_b ----------------
  Bp = ((B + tile_b - 1) // tile_b) * tile_b
  pad_b = Bp - B
  if pad_b:
    bpad = lambda x: jnp.pad(x, ((0, pad_b),) + ((0, 0),) * (x.ndim - 1))
    key = bpad(key)
    value = bpad(value)
    unfold = bpad(unfold)
    q_proj = bpad(q_proj)
    mask2d = jnp.pad(mask2d, ((0, pad_b), (0, 0)), constant_values=1)

  kernel = functools.partial(_location_attn_kernel,
                             sharpening_factor=float(sharpening_factor))

  def whole(arr):
    nd = arr.ndim
    return pl.BlockSpec(arr.shape, lambda b, _nd=nd: (0,) * _nd)

  grid_spec = pltpu.PrefetchScalarGridSpec(
      num_scalar_prefetch=0,
      grid=(Bp // tile_b,),
      in_specs=[
          pl.BlockSpec((tile_b, kmax, key_dim), lambda b: (b, 0, 0)),    # key
          pl.BlockSpec((tile_b, kmax, value_dim), lambda b: (b, 0, 0)),  # value
          pl.BlockSpec((tile_b, kmax, n_taps), lambda b: (b, 0, 0)),     # unfold
          pl.BlockSpec((tile_b, 1, attn_dim), lambda b: (b, 0, 0)),      # q_proj
          pl.BlockSpec((tile_b, kmax), lambda b: (b, 0)),                # mask
          whole(wkT), whole(bk), whole(M), whole(v_row),
      ],
      out_specs=[
          pl.BlockSpec((tile_b, value_dim), lambda b: (b, 0)),           # cv
          pl.BlockSpec((tile_b, kmax), lambda b: (b, 0)),                # aw
      ],
  )

  cv_p, aw_p = pl.pallas_call(
      kernel,
      out_shape=(
          jax.ShapeDtypeStruct((Bp, value_dim), jnp.float32),
          jax.ShapeDtypeStruct((Bp, kmax), jnp.float32),
      ),
      grid_spec=grid_spec,
      compiler_params=pltpu.CompilerParams(dimension_semantics=("parallel",)),
  )(key, value, unfold, q_proj, mask2d,
    wkT.astype(jnp.float32), bk.astype(jnp.float32), M, v_row)

  cv = cv_p[:B][:, None, :]        # (B, 1, value_dim)
  aw = aw_p[:B][..., None]         # (B, kmax, 1)
  return cv, aw


def reference(key, value, query, mask, aw_prev, params, sharpening_factor=1.0):
  """Plain-JAX mirror of the PyTorch forward (attn_type='location')."""
  wkT, bk, wqT, wcT, convT, v = params
  B, kmax, _ = key.shape
  K = (convT.shape[0] - 1) // 2
  aw = aw_prev[..., 0]                                                   # (B, kmax)
  pad = jnp.pad(aw, ((0, 0), (K, K)))
  unfold = jnp.stack([pad[:, j:j + kmax] for j in range(2 * K + 1)], axis=-1)
  conv_feat = unfold @ convT                                             # (B, kmax, C)
  k_proj = key @ wkT + bk
  q_proj = query @ wqT                                                   # (B, 1, attn_dim)
  c_proj = conv_feat @ wcT
  e = jnp.tanh(k_proj + q_proj + c_proj) @ v                             # (B, kmax, 1)
  mask3 = mask if mask.ndim == 3 else mask[:, None, :]
  e = jnp.where(jnp.transpose(mask3, (0, 2, 1)) == 0, NEG_INF, e)
  e = e[..., 0] * sharpening_factor
  aw_out = jax.nn.softmax(e, axis=-1)                                    # (B, kmax)
  cv = jnp.einsum('bk,bkd->bd', aw_out, value)[:, None, :]
  return cv, aw_out[..., None]


if __name__ == "__main__":
  B, kmax = 16, 16
  key_dim, query_dim, value_dim = 32, 20, 24
  attn_dim, conv_out_channels, conv_kernel_size = 32, 10, 3
  sharpening_factor = 1.0

  rng = jax.random.PRNGKey(0)
  ks = jax.random.split(rng, 10)

  key = jax.random.normal(ks[0], (B, kmax, key_dim), jnp.float32)
  value = jax.random.normal(ks[1], (B, kmax, value_dim), jnp.float32)
  query = jax.random.normal(ks[2], (B, 1, query_dim), jnp.float32)
  aw_prev = jax.nn.softmax(jax.random.normal(ks[3], (B, kmax)), axis=-1)[..., None]

  # mask: [B, qmax=1, kmax] like the PyTorch docstring (1 = keep, 0 = pad).
  mask = jnp.ones((B, 1, kmax), jnp.int32)
  mask = mask.at[1, :, kmax - 5:].set(0)     # batch 1 is shorter
  mask = mask.at[9, :, kmax - 3:].set(0)     # batch 9 is shorter

  # Deterministic parameter init (nn.Linear / nn.Conv2d shapes, pre-transposed):
  #   wkT = w_key.weight.T, bk = w_key.bias, wqT = w_query.weight.T,
  #   wcT = w_conv.weight.T, convT = conv.weight[:,0,0,:].T, v = v.weight.T
  wkT = 0.1 * jax.random.normal(ks[4], (key_dim, attn_dim), jnp.float32)
  bk = 0.1 * jax.random.normal(ks[5], (1, attn_dim), jnp.float32)
  wqT = 0.1 * jax.random.normal(ks[6], (query_dim, attn_dim), jnp.float32)
  wcT = 0.1 * jax.random.normal(ks[7], (conv_out_channels, attn_dim), jnp.float32)
  convT = 0.1 * jax.random.normal(
      ks[8], (2 * conv_kernel_size + 1, conv_out_channels), jnp.float32)
  v = 0.1 * jax.random.normal(ks[9], (attn_dim, 1), jnp.float32)
  params = (wkT, bk, wqT, wcT, convT, v)

  cv, aw = location_attention(key, value, query, mask, aw_prev, params,
                              sharpening_factor=sharpening_factor, tile_b=8)
  cv, aw = jax.block_until_ready((cv, aw))

  cv_ref, aw_ref = reference(key, value, query, mask, aw_prev, params,
                             sharpening_factor=sharpening_factor)
  np.testing.assert_allclose(np.asarray(cv), np.asarray(cv_ref), rtol=2e-4, atol=2e-5)
  np.testing.assert_allclose(np.asarray(aw), np.asarray(aw_ref), rtol=2e-4, atol=2e-5)
  assert cv.shape == (B, 1, value_dim) and aw.shape == (B, kmax, 1)

  print("KERNEL_OK")
</pallas_src>

<mosaic_0001>
module attributes {stable_mosaic.version = 11 : i64} {
  func.func @_location_attn_kernel(%arg0: i32, %arg1: memref<8x16x32xf32, #tpu.memory_space<vmem>>, %arg2: memref<8x16x24xf32, #tpu.memory_space<vmem>>, %arg3: memref<8x16x7xf32, #tpu.memory_space<vmem>>, %arg4: memref<8x1x32xf32, #tpu.memory_space<vmem>>, %arg5: memref<8x16xi32, #tpu.memory_space<vmem>>, %arg6: memref<32x32xf32, #tpu.memory_space<vmem>>, %arg7: memref<1x32xf32, #tpu.memory_space<vmem>>, %arg8: memref<7x32xf32, #tpu.memory_space<vmem>>, %arg9: memref<1x32xf32, #tpu.memory_space<vmem>>, %arg10: memref<8x24xf32, #tpu.memory_space<vmem>>, %arg11: memref<8x16xf32, #tpu.memory_space<vmem>>) attributes {dimension_semantics = [#tpu.dimension_semantics<parallel>], iteration_bounds = array<i64: 2>, scalar_prefetch = 0 : i64, scratch_operands = 0 : i64, tpu.core_type = #tpu.core_type<tc>, window_params = [{transform_indices = @transform_0, window_bounds = array<i64: 8, 16, 32>}, {transform_indices = @transform_1, window_bounds = array<i64: 8, 16, 24>}, {transform_indices = @transform_2, window_bounds = array<i64: 8, 16, 7>}, {transform_indices = @transform_3, window_bounds = array<i64: 8, 1, 32>}, {transform_indices = @transform_4, window_bounds = array<i64: 8, 16>}, {pipeline_mode = #tpu.pipeline_mode<synchronous>, transform_indices = @transform_5, window_bounds = array<i64: 32, 32>}, {pipeline_mode = #tpu.pipeline_mode<synchronous>, transform_indices = @transform_6, window_bounds = array<i64: 1, 32>}, {pipeline_mode = #tpu.pipeline_mode<synchronous>, transform_indices = @transform_7, window_bounds = array<i64: 7, 32>}, {pipeline_mode = #tpu.pipeline_mode<synchronous>, transform_indices = @transform_8, window_bounds = array<i64: 1, 32>}, {transform_indices = @transform_9, window_bounds = array<i64: 8, 24>}, {transform_indices = @transform_10, window_bounds = array<i64: 8, 16>}]} {
    %c0 = arith.constant 0 : index
    %c0_0 = arith.constant 0 : index
    %c0_1 = arith.constant 0 : index
    %0 = vector.load %arg1[%c0, %c0_0, %c0_1] : memref<8x16x32xf32, #tpu.memory_space<vmem>>, vector<8x16x32xf32>
    %1 = vector.shape_cast %0 : vector<8x16x32xf32> to vector<128x32xf32>
    %c0_2 = arith.constant 0 : index
    %c0_3 = arith.constant 0 : index
    %2 = vector.load %arg6[%c0_2, %c0_3] : memref<32x32xf32, #tpu.memory_space<vmem>>, vector<32x32xf32>
    %cst = arith.constant dense<0.000000e+00> : vector<128x32xf32>
    %3 = tpu.matmul %1, %2, %cst {dimension_numbers = #tpu.dot_dimension_numbers<[1], [0], [0], [1], [0, 0, 1, 1], [], []>} : vector<128x32xf32>, vector<32x32xf32>, vector<128x32xf32> -> vector<128x32xf32>
    %c0_4 = arith.constant 0 : index
    %c0_5 = arith.constant 0 : index
    %4 = vector.load %arg7[%c0_4, %c0_5] : memref<1x32xf32, #tpu.memory_space<vmem>>, vector<1x32xf32>
    %5 = vector.broadcast %4 : vector<1x32xf32> to vector<128x32xf32>
    %6 = arith.addf %3, %5 : vector<128x32xf32>
    %c0_6 = arith.constant 0 : index
    %c0_7 = arith.constant 0 : index
    %c0_8 = arith.constant 0 : index
    %7 = vector.load %arg3[%c0_6, %c0_7, %c0_8] : memref<8x16x7xf32, #tpu.memory_space<vmem>>, vector<8x16x7xf32>
    %8 = vector.shape_cast %7 : vector<8x16x7xf32> to vector<128x7xf32>
    %c0_9 = arith.constant 0 : index
    %c0_10 = arith.constant 0 : index
    %9 = vector.load %arg8[%c0_9, %c0_10] : memref<7x32xf32, #tpu.memory_space<vmem>>, vector<7x32xf32>
    %cst_11 = arith.constant dense<0.000000e+00> : vector<128x32xf32>
    %10 = tpu.matmul %8, %9, %cst_11 {dimension_numbers = #tpu.dot_dimension_numbers<[1], [0], [0], [1], [0, 0, 1, 1], [], []>} : vector<128x7xf32>, vector<7x32xf32>, vector<128x32xf32> -> vector<128x32xf32>
    %11 = arith.addf %6, %10 : vector<128x32xf32>
    %12 = vector.shape_cast %11 : vector<128x32xf32> to vector<8x16x32xf32>
    %c0_12 = arith.constant 0 : index
    %c0_13 = arith.constant 0 : index
    %c0_14 = arith.constant 0 : index
    %13 = vector.load %arg4[%c0_12, %c0_13, %c0_14] : memref<8x1x32xf32, #tpu.memory_space<vmem>>, vector<8x1x32xf32>
    %14 = vector.broadcast %13 : vector<8x1x32xf32> to vector<8x16x32xf32>
    %15 = arith.addf %12, %14 : vector<8x16x32xf32>
    %16 = math.tanh %15 : vector<8x16x32xf32>
    %c0_15 = arith.constant 0 : index
    %c0_16 = arith.constant 0 : index
    %17 = vector.load %arg9[%c0_15, %c0_16] : memref<1x32xf32, #tpu.memory_space<vmem>>, vector<1x32xf32>
    %18 = vector.shape_cast %17 : vector<1x32xf32> to vector<1x1x32xf32>
    %19 = vector.broadcast %18 : vector<1x1x32xf32> to vector<8x16x32xf32>
    %20 = arith.mulf %16, %19 : vector<8x16x32xf32>
    %cst_17 = arith.constant dense<0.000000e+00> : vector<8x16xf32>
    %21 = vector.multi_reduction <add>, %20, %cst_17 [2] : vector<8x16x32xf32> to vector<8x16xf32>
    %c0_18 = arith.constant 0 : index
    %c0_19 = arith.constant 0 : index
    %22 = vector.load %arg5[%c0_18, %c0_19] : memref<8x16xi32, #tpu.memory_space<vmem>>, vector<8x16xi32>
    %c0_i32 = arith.constant 0 : i32
    %23 = vector.broadcast %c0_i32 : i32 to vector<8x16xi32>
    %24 = arith.cmpi eq, %22, %23 : vector<8x16xi32>
    %cst_20 = arith.constant -3.40282347E+38 : f32
    %25 = vector.broadcast %cst_20 : f32 to vector<8x16xf32>
    %26 = arith.select %24, %25, %21 : vector<8x16xi1>, vector<8x16xf32>
    %cst_21 = arith.constant 1.000000e+00 : f32
    %27 = vector.broadcast %cst_21 : f32 to vector<8x16xf32>
    %28 = arith.mulf %26, %27 : vector<8x16xf32>
    %cst_22 = arith.constant dense<0xFF800000> : vector<8xf32>
    %29 = vector.multi_reduction <maximumf>, %28, %cst_22 [1] : vector<8x16xf32> to vector<8xf32>
    %30 = vector.shape_cast %29 : vector<8xf32> to vector<8x1xf32>
    %31 = vector.broadcast %30 : vector<8x1xf32> to vector<8x16xf32>
    %32 = arith.subf %28, %31 : vector<8x16xf32>
    %33 = math.exp %32 : vector<8x16xf32>
    %cst_23 = arith.constant dense<0.000000e+00> : vector<8xf32>
    %34 = vector.multi_reduction <add>, %33, %cst_23 [1] : vector<8x16xf32> to vector<8xf32>
    %35 = vector.shape_cast %34 : vector<8xf32> to vector<8x1xf32>
    %36 = vector.broadcast %35 : vector<8x1xf32> to vector<8x16xf32>
    %37 = arith.divf %33, %36 : vector<8x16xf32>
    %38 = vector.shape_cast %37 : vector<8x16xf32> to vector<8x1x16xf32>
    %c0_24 = arith.constant 0 : index
    %c0_25 = arith.constant 0 : index
    %c0_26 = arith.constant 0 : index
    %39 = vector.load %arg2[%c0_24, %c0_25, %c0_26] : memref<8x16x24xf32, #tpu.memory_space<vmem>>, vector<8x16x24xf32>
    "tpu.trace_start"() <{level = 10 : i32, message = "bqk,bkd->bqd"}> : () -> ()
    %cst_27 = arith.constant dense<0.000000e+00> : vector<8x1x24xf32>
    %40 = tpu.matmul %38, %39, %cst_27 {dimension_numbers = #tpu.dot_dimension_numbers<[2], [1], [1], [2], [0, 0, 0, 1, 1, 2], [0], [0]>} : vector<8x1x16xf32>, vector<8x16x24xf32>, vector<8x1x24xf32> -> vector<8x1x24xf32>
    "tpu.trace_stop"() : () -> ()
    %c0_28 = arith.constant 0 : index
    %c0_29 = arith.constant 0 : index
    %41 = vector.load %arg11[%c0_28, %c0_29] : memref<8x16xf32, #tpu.memory_space<vmem>>, vector<8x16xf32>
    tpu.vector_store %arg11[%c0_28, %c0_29], %37 {strides = array<i32>} : memref<8x16xf32, #tpu.memory_space<vmem>>, vector<8x16xf32>,
    %42 = vector.shape_cast %40 : vector<8x1x24xf32> to vector<8x24xf32>
    %c0_30 = arith.constant 0 : index
    %c0_31 = arith.constant 0 : index
    %43 = vector.load %arg10[%c0_30, %c0_31] : memref<8x24xf32, #tpu.memory_space<vmem>>, vector<8x24xf32>
    tpu.vector_store %arg10[%c0_30, %c0_31], %42 {strides = array<i32>} : memref<8x24xf32, #tpu.memory_space<vmem>>, vector<8x24xf32>,
    return
  }
  func.func @transform_0(%arg0: i32) -> (i32, i32, i32) {
    %c0_i32 = arith.constant 0 : i32
    %c0_i32_0 = arith.constant 0 : i32
    %c0_i32_1 = arith.constant 0 : i32
    return %arg0, %c0_i32, %c0_i32_0 : i32, i32, i32
  }
  func.func @transform_1(%arg0: i32) -> (i32, i32, i32) {
    %c0_i32 = arith.constant 0 : i32
    %c0_i32_0 = arith.constant 0 : i32
    %c0_i32_1 = arith.constant 0 : i32
    return %arg0, %c0_i32, %c0_i32_0 : i32, i32, i32
  }
  func.func @transform_2(%arg0: i32) -> (i32, i32, i32) {
    %c0_i32 = arith.constant 0 : i32
    %c0_i32_0 = arith.constant 0 : i32
    %c0_i32_1 = arith.constant 0 : i32
    return %arg0, %c0_i32, %c0_i32_0 : i32, i32, i32
  }
  func.func @transform_3(%arg0: i32) -> (i32, i32, i32) {
    %c0_i32 = arith.constant 0 : i32
    %c0_i32_0 = arith.constant 0 : i32
    %c0_i32_1 = arith.constant 0 : i32
    return %arg0, %c0_i32, %c0_i32_0 : i32, i32, i32
  }
  func.func @transform_4(%arg0: i32) -> (i32, i32) {
    %c0_i32 = arith.constant 0 : i32
    %c0_i32_0 = arith.constant 0 : i32
    return %arg0, %c0_i32 : i32, i32
  }
  func.func @transform_5(%arg0: i32) -> (i32, i32) {
    %c0_i32 = arith.constant 0 : i32
    %c0_i32_0 = arith.constant 0 : i32
    %c0_i32_1 = arith.constant 0 : i32
    return %c0_i32, %c0_i32_0 : i32, i32
  }
  func.func @transform_6(%arg0: i32) -> (i32, i32) {
    %c0_i32 = arith.constant 0 : i32
    %c0_i32_0 = arith.constant 0 : i32
    %c0_i32_1 = arith.constant 0 : i32
    return %c0_i32, %c0_i32_0 : i32, i32
  }
  func.func @transform_7(%arg0: i32) -> (i32, i32) {
    %c0_i32 = arith.constant 0 : i32
    %c0_i32_0 = arith.constant 0 : i32
    %c0_i32_1 = arith.constant 0 : i32
    return %c0_i32, %c0_i32_0 : i32, i32
  }
  func.func @transform_8(%arg0: i32) -> (i32, i32) {
    %c0_i32 = arith.constant 0 : i32
    %c0_i32_0 = arith.constant 0 : i32
    %c0_i32_1 = arith.constant 0 : i32
    return %c0_i32, %c0_i32_0 : i32, i32
  }
  func.func @transform_9(%arg0: i32) -> (i32, i32) {
    %c0_i32 = arith.constant 0 : i32
    %c0_i32_0 = arith.constant 0 : i32
    return %arg0, %c0_i32 : i32, i32
  }
  func.func @transform_10(%arg0: i32) -> (i32, i32) {
    %c0_i32 = arith.constant 0 : i32
    %c0_i32_0 = arith.constant 0 : i32
    return %arg0, %c0_i32 : i32, i32
  }
}

</mosaic_0001>

<bundles_post_ra>
// kernel: tpu_custom_call.1
= control target key start
LH: loop header
LB: loop body
LE: loop exit
PB: predicated region body
PF: predicated region fallthrough
CT: control target
= control target key end

     0   :  { %16 = vsyncpa [#allocation3], 0  ;;  %s3026_s0 = inlined_call_operand.vmem [shape: f32[16,16,32], index: 0, kind: input, shape index: {}]   ;;  %s3027_s1 = inlined_call_operand.hbm [shape: f32[16,16,24], index: 1, kind: input, shape index: {}]   ;;  %s3028_s2 = inlined_call_operand.vmem [shape: f32[16,16,7], index: 2, kind: input, shape index: {}]   ;;  %s3029_s3 = inlined_call_operand.vmem [shape: f32[16,1,32], index: 3, kind: input, shape index: {}]   ;;  %s3030_s4 = inlined_call_operand.vmem [shape: s32[16,16], index: 4, kind: input, shape index: {}]   ;;  %s3031_s5 = inlined_call_operand.vmem [shape: f32[32,32], index: 5, kind: input, shape index: {}]   ;;  %s3032_s6 = inlined_call_operand.vmem [shape: f32[1,32], index: 6, kind: input, shape index: {}]   ;;  %s3033_s7 = inlined_call_operand.vmem [shape: f32[7,32], index: 7, kind: input, shape index: {}]   ;;  %s3034_s8 = inlined_call_operand.vmem [shape: f32[1,32], index: 8, kind: input, shape index: {}]   ;;  %s3035_s9 = inlined_call_operand.hbm [shape: f32[16,24], index: 9, kind: output, shape index: {0}]   ;;  %s3036_s10 = inlined_call_operand.hbm [shape: f32[16,16], index: 10, kind: output, shape index: {1}]  }
   0x1   :  { %18 = vsyncpa [#allocation3 + $0x1], 0 }
   0x2   :  { %19 = vsyncpa [#allocation4], 0 }
   0x3   :  { %21 = vsyncpa [#allocation4 + $0x1], 0 }
   0x4   :  { %22 = vsyncpa [#allocation7], 0 }
   0x5   :  { %24 = vsyncpa [#allocation7 + $0x1], 0  ;;  %s2591_s13 = smov 0   ;;  %s2593_s14 = smov 0  }
   0x6   :  { %s2595_s15 = smov 0   ;;  %s2597_s16 = smov 0  }
   0x7 LB: > { %3044 = sst [smem:[#allocation11_spill]] %s2522_s15  ;;  %s2612_s17 = sadd.s32 4294967295, %s2526_s16   ;;  %s2526_s16 = sphi %s2597_s16, %s3058_s16   ;;  %s2522_s15 = sphi %s2595_s15, %s3060_s15   ;;  %s2518_s14 = sphi %s2593_s14, %s3062_s14   ;;  %s2514_s13 = sphi %s2591_s13, %s3061_s13  }
   0x8   : > { %s2057_s18 = sadd.s32 4294967294, %s2526_s16   ;;  %s2616_s19 = sadd.s32 1, %s2526_s16  }
   0x9   : > { %3045 = sst [smem:[#allocation12_spill]] %s2616_s19  ;;  %s63_s20 = sadd.s32 1, %s2522_s15 }
   0xa   : > { %s60_s21 = ssub.s32 %s2526_s16, %s2616_s19  ;;  %p70_p0 = scmp.ne.s32.totalorder %s2522_s15, %s2518_s14 }
   0xb   : > { %p61_p1 = scmp.eq.s32.totalorder %s60_s21, 0  ;;  %p71_p2 = scmp.eq.s32.totalorder %s2526_s16, 0 }
   0xc   : > { %p76_p3 = scmp.ne.s32.totalorder %s2518_s14, %s2514_s13  ;;  %p77_p4 = scmp.eq.s32.totalorder %s2612_s17, 0 }
   0xd   : > { %s2628_s22 = scalar_select %p61_p1, %s2522_s15, %s63_s20  }
   0xe   : > { %p2630_p5 = por %p71_p2, %p70_p0  ;;  %p2634_p6 = por %p77_p4, %p76_p3 }
   0xf   : > { %3046 = sst [smem:[#allocation13_spill]] %s2628_s22  ;;  %p262_p7 = scmp.eq.s32.totalorder %s2612_s17, 1 }
  0x10   : > { %s3048_s24 = scalar_select %p2634_p6, 1, 0 }
  0x11   : > { %p268_p8 = scmp.eq.s32.totalorder %s2057_s18, 1  ;;  %p2329_p10 = scmp.lt.s32.totalorder %s2526_s16, 2 }
  0x12   : > { %p2641_p11 = por %p262_p7, %p70_p0  ;;  %s336_s27 = sand.u32 1, %s2522_s15  }
  0x13   : > { %p2645_p12 = por %p268_p8, %p76_p3  ;;  %s2134_s28 = sshll.u32 %s2526_s16, 11 }
  0x14   : > { %s3049_s25 = scalar_select %p2641_p11, 1, 0 }
  0x15   : > { %s3050_s26 = scalar_select %p2645_p12, 1, 0 }
  0x16   : > { %s2060_s29 = sshll.u32 %s336_s27, 7  ;;  %s2654_s12 = scalar_lea.hbm %s3027_s1, %s2134_s28 }
  0x17   : > { %s340_s18 = scalar_lea.vmem [#allocation2], %s2060_s29  ;;  %p2658_p13 = pnand %p2329_p10, %p2630_p5 }
  0x18   : > { %s348_s20 = sshll.u32 %s340_s18, 4  ;;  %s2664_s22 = scalar_lea.sflag [#allocation3], %s336_s27  ;;  %s2662_s20 = int_to_ptr.vmem [resolvable:$true] %s348_s20 }
  0x19   : > { %s2404_s15 = scalar_lea.hbm %s2654_s12, 2048  ;;  %p2406_p1 = pneg %p2658_p13 }
  0x1a   : > { %p2405_p0 = scmp.ne.s32.totalorder %s2654_s12, %s2404_s15  ;;  %s2409_s29 = scalar_lea.hbm %s3027_s1, 4096 }
  0x1b   : > { %p2410_p4 = scmp.lt.s32.totalorder %s2654_s12, %s3027_s1  ;;  %p2411_p5 = scmp.lt.s32.totalorder %s2409_s29, %s2404_s15 }
  0x1c   : > { %p2407_p2 = pnand %p2406_p1, %p2405_p0 }
  0x1d   : > { %p2412_p7 = por %p2411_p5, %p2410_p4 }
  0x1e   : > { %p2408_p3 = pneg %p2407_p2 }
  0x20   : > { %p2413_p8 = pnand %p2412_p7, %p2408_p3 }
  0x22   : > { %2416 = shalt.err (!%p2413_p8)
}
  0x23   : > { %s2417_s27 = scalar_lea.vmem %s2662_s20, 2048  ;;  %s2528_s18 = smov [#allocation2]  }
  0x24   : > { %p2418_p10 = scmp.ne.s32.totalorder %s2662_s20, %s2417_s27  ;;  %s2422_s19 = sshll.u32 %s2528_s18, 4  ;;  %s2423_s19 = int_to_ptr.vmem [resolvable:$false] %s2422_s19 }
  0x25   : > { %s2424_s28 = scalar_lea.vmem %s2423_s19, 4096  ;;  %p2425_p2 = scmp.lt.s32.totalorder %s2662_s20, %s2423_s19 }
  0x26   : > { %p2420_p9 = pnand %p2418_p10, %p2406_p1  ;;  %p2426_p12 = scmp.lt.s32.totalorder %s2424_s28, %s2417_s27 }
  0x28   : > { %p2421_p0 = pneg %p2420_p9  ;;  %p2427_p11 = por %p2426_p12, %p2425_p2 }
  0x2a   : > { %p2428_p6 = pnand %p2427_p11, %p2421_p0 }
  0x2c   : > { %2431 = shalt.err (!%p2428_p6)
}
  0x2d   : > { %s2529_s15 = smov 128   ;;  %s2530_s30 = smov 8  }
  0x2e   : > { %2321 = dma.hbm_to_vmem [thread:$0]  (!%p2658_p13), %s2654_s12, 2048, %s2662_s20, %s2664_s22, %s2529_s15, %s2529_s15, %s2530_s30  }
  0x2f   : > { %p2064_p9 = scmp.ge.s32.totalorder %s2526_s16, 1  ;;  %p381_p1 = scmp.lt.s32.totalorder %s2526_s16, 3 }
  0x31   : > { %p382_p3 = pnand %p2064_p9, %p381_p1 }
  0x32   : > { %s2688_s19 = sand.u32 (!%p382_p3), 1, %s2518_s14   ;;  %p3052_p6 = scmp.ne.s32.totalorder (!%p382_p3), %s3048_s24, 0 }
  0x33   : > { %385 = sbr.rel (%p382_p3) target bundleno = 1001 (0x3e9), region = 56  ;;  %s2065_s29 = sshll.u32 (!%p382_p3), %s2688_s19, 7 }
  0x34   : > { %s388_s23 = scalar_lea.sflag (!%p382_p3), [#allocation3], %s2688_s19  ;;  %s2692_s11 = scalar_lea.vmem (!%p382_p3), [#allocation2], %s2065_s29 }
  0x38   : > { %2501 = dma.done.wait (%p3052_p6), %s388_s23, 2048  }
  0x39   : > { %2503 = vsyncadd (%p3052_p6), %s388_s23, 4294965248  ;;  %s2068_s22 = sshll.u32 %s2612_s17, 3  ;;  %vm764_vm0 = vcmask 1046528   ;;  %v496_v0 = vld [vmem:[%s3031_s5 + $0x18] sm:$0xff]  ;;  %v495_v1 = vld [vmem:[%s3031_s5 + $0x10] sm:$0xff]  ;;  %vm504_vm1 = vcmask 261120  }
  0x3a   : > { %p454_p11 = scmp.lt.s32.totalorder %s2068_s22, 15  ;;  %2198 = vmatprep.subr.mxu0 %v496_v0  ;;  %v714_v2 = vld [vmem:[%s3033_s7] sm:$0x7f]  ;;  %v494_v4 = vld [vmem:[%s3031_s5 + $0x8] sm:$0xff]  ;;  %vm715_vm2 = vcmask 56320   ;;  %p473_p12 = scmp.lt.s32.totalorder %s2612_s17, 1 }
  0x3b   : > { %2199 = vmatpush3.msra.mxu0 %v496_v0  ;;  %2230 = vmatprep.subr.msk.mxu1 %vm764_vm0, %v714_v2  ;;  %v493_v7 = vld [vmem:[%s3031_s5] sm:$0xff]  ;;  %vm1117_vm3 = vcmask 130112   ;;  %vm1182_vm4 = vcmask 1041409   ;;  %vm1184_vm5 = vcmask 1042434   ;;  %vm1186_vm6 = vcmask 1043459   ;;  %s3043_s30 = sshll.u32 %s2688_s19, 3 }
  0x3c   : > { %s3064_s22 = smov (!%p454_p11, %s2068_s22), 15  ;;  %2200 = vmatprep.subr.mxu0 %v495_v1  ;;  %2231 = vmatpush3.msk.msra.mxu1 %vm764_vm0, %v714_v2  ;;  %v2796_v38 = vld [vmem:[%s3032_s6] ss:$0 sm:$0xff]  ;;  %vm1188_vm7 = vcmask 1044484   ;;  %vm1190_vm8 = vcmask 1045509   ;;  %vm1192_vm9 = vcmask 1046534  }
  0x3d   : > { %s2135_s12 = sshll.u32 %s3064_s22, 4  ;;  %2201 = vmatpush3.msra.mxu0 %v495_v1  ;;  %s2802_s21 = scalar_lea.vmem %s3029_s3, %s3064_s22  ;;  %vm1194_vm10 = vcmask 1047559   ;;  %vm1198_vm12 = vcmask 130048   ;;  %vm2532_vm13 = vmmov 0  }
  0x3e   : > { %s2705_s27 = scalar_lea.vmem %s3026_s0, %s2135_s12  ;;  %s2710_s15 = scalar_lea.vmem %s3028_s2, %s2135_s12  ;;  %2202 = vmatprep.subr.mxu0 %v494_v4  ;;  %v2110_v43 = vld [vmem:[%s2802_s21] ss:$0 sm:$0xff]  ;;  %v2111_v53 = vld [vmem:[%s2802_s21 + $0x1] ss:$0 sm:$0xff]  ;;  %v2112_v1 = vld [vmem:[%s2802_s21 + $0x2] ss:$0 sm:$0xff] }
  0x3f   : > { %v477_v3 = vld [vmem:[%s2705_s27] sm:$0xff]  ;;  %v699_v6 = vld [vmem:[%s2710_s15 + $0x8] sm:$0xff]  ;;  %v700_v8 = vld [vmem:[%s2710_s15 + $0x10] sm:$0xff]  ;;  %2203 = vmatpush3.msra.mxu0 %v494_v4  ;;  %s2909_s29 = scalar_lea.vmem [#allocation6], %s3043_s30  ;;  %s3042_s23 = sshll.u32 %s2612_s17, 7 }
  0x40   : > { %v698_v5 = vld [vmem:[%s2710_s15] sm:$0xff]  ;;  %2206 = vmatprep.mubr.msk.f32.mxu0 %vm504_vm1, %v477_v3  ;;  %v478_v9 = vld [vmem:[%s2705_s27 + $0x8] sm:$0xff]  ;;  %2204 = vmatprep.subr.mxu0 %v493_v7  ;;  %v479_v10 = vld [vmem:[%s2705_s27 + $0x10] sm:$0xff]  ;;  %s1908_s22 = scalar_lea.hbm %s3036_s10, %s3042_s23  ;;  %p3053_p4 = scmp.ne.s32.totalorder %s3049_s25, 0 }
  0x41   : > { %2232 = vmatprep.mubr.msk.f32.mxu1 %vm715_vm2, %v698_v5  ;;  %v701_v11 = vld [vmem:[%s2710_s15 + $0x18] sm:$0xff]  ;;  %2205 = vmatpush3.msra.mxu0 %v493_v7  ;;  %v702_v12 = vld [vmem:[%s2710_s15 + $0x20] sm:$0xff]  ;;  %v703_v15 = vld [vmem:[%s2710_s15 + $0x28] sm:$0xff] }
  0x42   : > { %2233 = vmatmul.mubr.msk.f32.vlgmr.msra.gmra.mxu1 %vm715_vm2, %v699_v6  ;;  %2207 = vmatmul.mubr.msk.f32.vlgmr.msra.gmra.mxu0 %vm504_vm1, %v478_v9  ;;  %v480_v13 = vld [vmem:[%s2705_s27 + $0x18] sm:$0xff]  ;;  %v481_v14 = vld [vmem:[%s2705_s27 + $0x20] sm:$0xff]  ;;  %v704_v16 = vld [vmem:[%s2710_s15 + $0x30] sm:$0xff] }
  0x43   : > { %2235 = vmatprep.mubr.msk.f32.mxu1 %vm715_vm2, %v700_v8  ;;  %2209 = vmatprep.mubr.msk.f32.mxu0 %vm504_vm1, %v479_v10  ;;  %v482_v17 = vld [vmem:[%s2705_s27 + $0x28] sm:$0xff]  ;;  %v483_v18 = vld [vmem:[%s2705_s27 + $0x30] sm:$0xff]  ;;  %v705_v19 = vld [vmem:[%s2710_s15 + $0x38] sm:$0xff] }
  0x44   : > { %v706_v20 = vld [vmem:[%s2710_s15 + $0x40] sm:$0xff]  ;;  %v484_v21 = vld [vmem:[%s2705_s27 + $0x38] sm:$0xff]  ;;  %v707_v23 = vld [vmem:[%s2710_s15 + $0x48] sm:$0xff] }
  0x45   : > { %v485_v22 = vld [vmem:[%s2705_s27 + $0x40] sm:$0xff]  ;;  %v708_v24 = vld [vmem:[%s2710_s15 + $0x50] sm:$0xff]  ;;  %v486_v25 = vld [vmem:[%s2705_s27 + $0x48] sm:$0xff] }
  0x46   : > { %2236 = vmatmul.mubr.msk.f32.gmra.mxu1 %vm715_vm2, %v701_v11  ;;  %2210 = vmatmul.mubr.msk.f32.gmra.mxu0 %vm504_vm1, %v480_v13  ;;  %v487_v26 = vld [vmem:[%s2705_s27 + $0x50] sm:$0xff]  ;;  %v709_v27 = vld [vmem:[%s2710_s15 + $0x58] sm:$0xff]  ;;  %v710_v28 = vld [vmem:[%s2710_s15 + $0x60] sm:$0xff] }
  0x47   : > { %2238 = vmatprep.mubr.msk.f32.mxu1 %vm715_vm2, %v702_v12  ;;  %2212 = vmatprep.mubr.msk.f32.mxu0 %vm504_vm1, %v481_v14  ;;  %v488_v29 = vld [vmem:[%s2705_s27 + $0x58] sm:$0xff]  ;;  %v489_v30 = vld [vmem:[%s2705_s27 + $0x60] sm:$0xff]  ;;  %v711_v31 = vld [vmem:[%s2710_s15 + $0x68] sm:$0xff] }
  0x48   : > { %v712_v32 = vld [vmem:[%s2710_s15 + $0x70] sm:$0xff]  ;;  %v490_v33 = vld [vmem:[%s2705_s27 + $0x68] sm:$0xff]  ;;  %v713_v35 = vld [vmem:[%s2710_s15 + $0x78] sm:$0xff]  ;;  %s474_s15 = scalar_select %p473_p12, %s2612_s17, 1 }
  0x49   : > { %v491_v34 = vld [vmem:[%s2705_s27 + $0x70] sm:$0xff]  ;;  %v492_v36 = vld [vmem:[%s2705_s27 + $0x78] sm:$0xff]  ;;  %v2113_v12 = vld [vmem:[%s2802_s21 + $0x3] ss:$0 sm:$0xff]  ;;  %s1910_s27 = sshll.u32 %s2909_s29, 4  ;;  %s1911_s27 = int_to_ptr.vmem [resolvable:$true] %s1910_s27 }
  0x4a   : > { %2239 = vmatmul.mubr.msk.f32.gmra.mxu1 %vm715_vm2, %v703_v15  ;;  %2213 = vmatmul.mubr.msk.f32.gmra.mxu0 %vm504_vm1, %v482_v17  ;;  %s2075_s12 = sshll.u32 %s474_s15, 3  ;;  %s1884_s15 = scalar_lea.sflag [#allocation7], %s2688_s19 }
  0x4b   : > { %2241 = vmatprep.mubr.msk.f32.mxu1 %vm715_vm2, %v704_v16  ;;  %2215 = vmatprep.mubr.msk.f32.mxu0 %vm504_vm1, %v483_v18  ;;  %s476_s24 = scalar_lea.vmem %s3030_s4, %s2075_s12  ;;  %s2534_s12 = smov [#allocation6]  }
  0x4c   : > { %s2436_s18 = sshll.u32 %s2534_s12, 4  ;;  %s2437_s18 = int_to_ptr.vmem [resolvable:$false] %s2436_s18 }
  0x4d   : > { %s2438_s28 = scalar_lea.vmem %s2437_s18, 256  ;;  %p2439_p8 = scmp.lt.s32.totalorder %s1911_s27, %s2437_s18 }
  0x4e   : > { %2242 = vmatmul.mubr.msk.f32.gmra.mxu1 %vm715_vm2, %v705_v19  ;;  %2216 = vmatmul.mubr.msk.f32.gmra.mxu0 %vm504_vm1, %v484_v21 }
  0x4f   : > { %2244 = vmatprep.mubr.msk.f32.mxu1 %vm715_vm2, %v706_v20  ;;  %2218 = vmatprep.mubr.msk.f32.mxu0 %vm504_vm1, %v485_v22 }
  0x52   : > { %2245 = vmatmul.mubr.msk.f32.gmra.mxu1 %vm715_vm2, %v707_v23  ;;  %2219 = vmatmul.mubr.msk.f32.gmra.mxu0 %vm504_vm1, %v486_v25  ;;  %v2114_v23 = vld [vmem:[%s2802_s21 + $0x4] ss:$0 sm:$0xff] }
  0x53   : > { %2247 = vmatprep.mubr.msk.f32.mxu1 %vm715_vm2, %v708_v24  ;;  %2221 = vmatprep.mubr.msk.f32.mxu0 %vm504_vm1, %v487_v26 }
  0x56   : > { %2248 = vmatmul.mubr.msk.f32.gmra.mxu1 %vm715_vm2, %v709_v27  ;;  %2222 = vmatmul.mubr.msk.f32.gmra.mxu0 %vm504_vm1, %v488_v29 }
  0x57   : > { %2250 = vmatprep.mubr.msk.f32.mxu1 %vm715_vm2, %v710_v28  ;;  %2224 = vmatprep.mubr.msk.f32.mxu0 %vm504_vm1, %v489_v30  ;;  %v2822_v28 = vld [vmem:[%s3034_s8] ss:$0 sm:$0xff] }
  0x5a   : > { %2251 = vmatmul.mubr.msk.f32.gmra.mxu1 %vm715_vm2, %v711_v31  ;;  %2225 = vmatmul.mubr.msk.f32.gmra.mxu0 %vm504_vm1, %v490_v33 }
  0x5b   : > { %2253 = vmatprep.mubr.msk.f32.mxu1 %vm715_vm2, %v712_v32  ;;  %2227 = vmatprep.mubr.msk.f32.mxu0 %vm504_vm1, %v491_v34 }
  0x5e   : > { %2254 = vmatmul.mubr.msk.f32.gmra.mxu1 %vm715_vm2, %v713_v35  ;;  %2228 = vmatmul.mubr.msk.f32.gmra.mxu0 %vm504_vm1, %v492_v36 }
 0x102   : > { %v2234_v37 = vpop.f32.mrf.mxu1  ;;  %v2208_v40 = vpop.f32.mrf.mxu0 }
 0x103   : > { %v625_v41 = vadd.f32 %v2208_v40, %v2796_v38 }
 0x104   : > { %v834_v39 = vpop.f32.mrf.mxu1  ;;  %v619_v44 = vpop.f32.mrf.mxu0 }
 0x105   : > { %v914_v45 = vadd.f32 %v2234_v37, %v625_v41  ;;  %v620_v46 = vadd.f32 %v2796_v38, %v619_v44  ;;  %v2115_v37 = vld [vmem:[%s2802_s21 + $0x5] ss:$0 sm:$0xff] }
 0x106   : > { %v2237_v42 = vpop.f32.mrf.mxu1  ;;  %v2211_v48 = vpop.f32.mrf.mxu0 }
 0x107   : > { %v986_v49 = vadd.f32 %v2110_v43, %v914_v45  ;;  %v913_v50 = vadd.f32 %v834_v39, %v620_v46  ;;  %v635_v51 = vadd.f32 %v2211_v48, %v2796_v38 }
 0x108   : > { %v844_v47 = vpop.f32.mrf.mxu1  ;;  %v629_v54 = vpop.f32.mrf.mxu0 }
 0x109   : > { %2368 = vtanh.f32 %v986_v49  ;;  %v985_v55 = vadd.f32 %v2110_v43, %v913_v50  ;;  %v916_v56 = vadd.f32 %v2237_v42, %v635_v51  ;;  %v630_v57 = vadd.f32 %v2796_v38, %v629_v54 }
 0x10a   : > { %v2240_v52 = vpop.f32.mrf.mxu1  ;;  %v2214_v59 = vpop.f32.mrf.mxu0 }
 0x10b   : > { %2370 = vtanh.f32 %v985_v55  ;;  %v988_v60 = vadd.f32 %v2111_v53, %v916_v56  ;;  %v915_v61 = vadd.f32 %v844_v47, %v630_v57  ;;  %v645_v62 = vadd.f32 %v2214_v59, %v2796_v38 }
 0x10c   : > { %v854_v58 = vpop.f32.mrf.mxu1  ;;  %v639_v0 = vpop.f32.mrf.mxu0 }
 0x10d   : > { %2372 = vtanh.f32 %v988_v60  ;;  %v987_v2 = vadd.f32 %v2111_v53, %v915_v61  ;;  %v640_v3 = vadd.f32 %v2796_v38, %v639_v0  ;;  %v918_v4 = vadd.f32 %v2240_v52, %v645_v62  ;;  %v2116_v53 = vld [vmem:[%s2802_s21 + $0x6] ss:$0 sm:$0xff] }
 0x10e   : > { %v2243_v63 = vpop.f32.mrf.mxu1  ;;  %v2217_v6 = vpop.f32.mrf.mxu0 }
 0x10f   : > { %2374 = vtanh.f32 %v987_v2  ;;  %v990_v7 = vadd.f32 %v2112_v1, %v918_v4  ;;  %v655_v8 = vadd.f32 %v2217_v6, %v2796_v38  ;;  %v917_v9 = vadd.f32 %v854_v58, %v640_v3 }
 0x110   : > { %v864_v5 = vpop.f32.mrf.mxu1  ;;  %v649_v11 = vpop.f32.mrf.mxu0 }
 0x111   : > { %v989_v13 = vadd.f32 %v2112_v1, %v917_v9  ;;  %v650_v14 = vadd.f32 %v2796_v38, %v649_v11  ;;  %v920_v15 = vadd.f32 %v2243_v63, %v655_v8  ;;  %2376 = vtanh.f32 %v990_v7 }
 0x112   : > { %v2246_v10 = vpop.f32.mrf.mxu1  ;;  %v2220_v17 = vpop.f32.mrf.mxu0 }
 0x113   : > { %2378 = vtanh.f32 %v989_v13  ;;  %v992_v18 = vadd.f32 %v2113_v12, %v920_v15  ;;  %v665_v19 = vadd.f32 %v2220_v17, %v2796_v38  ;;  %v919_v20 = vadd.f32 %v864_v5, %v650_v14  ;;  %v2117_v5 = vld [vmem:[%s2802_s21 + $0x7] ss:$0 sm:$0xff] }
 0x114   : > { %v874_v16 = vpop.f32.mrf.mxu1  ;;  %v659_v22 = vpop.f32.mrf.mxu0 }
 0x115   : > { %v991_v24 = vadd.f32 %v2113_v12, %v919_v20  ;;  %v660_v25 = vadd.f32 %v2796_v38, %v659_v22  ;;  %v922_v26 = vadd.f32 %v2246_v10, %v665_v19  ;;  %2380 = vtanh.f32 %v992_v18 }
 0x116   : > { %v2249_v21 = vpop.f32.mrf.mxu1  ;;  %v2369_v29 = vpop.eup %2368 }
 0x117   : > { %v2223_v30 = vpop.f32.mrf.mxu0  ;;  %2382 = vtanh.f32 %v991_v24  ;;  %v994_v31 = vadd.f32 %v2114_v23, %v922_v26  ;;  %v921_v33 = vadd.f32 %v874_v16, %v660_v25  ;;  %v1025_v39 = vmul.f32 %v2369_v29, %v2822_v28 }
 0x118   : > { %v884_v27 = vpop.f32.mrf.mxu1  ;;  %v675_v32 = vadd.f32 %v2223_v30, %v2796_v38  ;;  %v2371_v35 = vpop.eup %2370 }
 0x119   : > { %v669_v36 = vpop.f32.mrf.mxu0  ;;  %v993_v40 = vadd.f32 %v2114_v23, %v921_v33  ;;  %2384 = vtanh.f32 %v994_v31  ;;  %v1043_v45 = vsel %vm504_vm1, %v1025_v39, 0.0  ;;  %v1024_v47 = vmul.f32 %v2371_v35, %v2822_v28 }
 0x11a   : > { %v2252_v34 = vpop.f32.mrf.mxu1  ;;  %v670_v41 = vadd.f32 %v2796_v38, %v669_v36  ;;  %v924_v42 = vadd.f32 %v2249_v21, %v675_v32  ;;  %v2373_v44 = vpop.eup %2372  ;;  %1044 = vadd.xlane.f32.xlu0 %v1043_v45 }
 0x11b   : > { %v2226_v46 = vpop.f32.mrf.mxu0  ;;  %2386 = vtanh.f32 %v993_v40  ;;  %v1027_v54 = vmul.f32 %v2373_v44, %v2822_v28  ;;  %v1040_v61 = vsel %vm504_vm1, %v1024_v47, 0.0 }
 0x11c   : > { %v894_v43 = vpop.f32.mrf.mxu1  ;;  %v996_v48 = vadd.f32 %v2115_v37, %v924_v42  ;;  %v923_v49 = vadd.f32 %v884_v27, %v670_v41  ;;  %v685_v50 = vadd.f32 %v2226_v46, %v2796_v38  ;;  %v2375_v51 = vpop.eup %2374 }
 0x11d   : > { %v679_v52 = vpop.f32.mrf.mxu0  ;;  %v1049_v59 = vsel %vm504_vm1, %v1027_v54, 0.0  ;;  %v1026_v62 = vmul.f32 %v2375_v51, %v2822_v28 }
 0x11e   : > { %v2255_v55 = vpop.f32.mrf.mxu1  ;;  %v995_v56 = vadd.f32 %v2115_v37, %v923_v49  ;;  %v680_v57 = vadd.f32 %v2796_v38, %v679_v52  ;;  %v926_v58 = vadd.f32 %v2252_v34, %v685_v50  ;;  %2388 = vtanh.f32 %v996_v48  ;;  %v2377_v63 = vpop.eup %2376  ;;  %1050 = vadd.xlane.f32.xlu1 %v1049_v59  ;;  %1041 = vadd.xlane.f32.xlu0 %v1040_v61 }
 0x11f   : > { %v2229_v60 = vpop.f32.mrf.mxu0  ;;  %v1046_v10 = vsel %vm504_vm1, %v1026_v62, 0.0  ;;  %v1029_v12 = vmul.f32 %v2377_v63, %v2822_v28 }
 0x120   : > { %2390 = vtanh.f32 %v995_v56  ;;  %v998_v0 = vadd.f32 %v2116_v53, %v926_v58  ;;  %v925_v1 = vadd.f32 %v894_v43, %v680_v57  ;;  %v695_v2 = vadd.f32 %v2229_v60, %v2796_v38  ;;  %v2379_v3 = vpop.eup %2378  ;;  %v904_v6 = vpop.f32.mrf.mxu1 }
 0x121   : > { %v689_v4 = vpop.f32.mrf.mxu0  ;;  %v1028_v11 = vmul.f32 %v2379_v3, %v2822_v28  ;;  %v1055_v19 = vsel %vm504_vm1, %v1029_v12, 0.0 }
 0x122   : > { %v997_v7 = vadd.f32 %v2116_v53, %v925_v1  ;;  %v690_v8 = vadd.f32 %v2796_v38, %v689_v4  ;;  %v928_v9 = vadd.f32 %v2255_v55, %v695_v2  ;;  %2392 = vtanh.f32 %v998_v0  ;;  %v2381_v13 = vpop.eup %2380  ;;  %1047 = vadd.xlane.f32.xlu1 %v1046_v10 }
 0x123   : > { %v1052_v17 = vsel %vm504_vm1, %v1028_v11, 0.0  ;;  %v1031_v20 = vmul.f32 %v2381_v13, %v2822_v28  ;;  %v1106_v53 = vlaneseq }
 0x124   : > { %2394 = vtanh.f32 %v997_v7  ;;  %v1000_v14 = vadd.f32 %v2117_v5, %v928_v9  ;;  %v927_v15 = vadd.f32 %v904_v6, %v690_v8  ;;  %v2383_v16 = vpop.eup %2382  ;;  %1053 = vadd.xlane.f32.xlu0 %v1052_v17 }
 0x125   : > { %v1030_v38 = vmul.f32 %v2383_v16, %v2822_v28  ;;  %v1061_v25 = vsel %vm504_vm1, %v1031_v20, 0.0  ;;  %v1107_v56 = vand.u32 127, %v1106_v53 }
 0x126   : > { %v999_v18 = vadd.f32 %v2117_v5, %v927_v15  ;;  %2396 = vtanh.f32 %v1000_v14  ;;  %v2385_v21 = vpop.eup %2384  ;;  %1056 = vadd.xlane.f32.xlu1 %v1055_v19 }
 0x127   : > { %v1058_v22 = vsel %vm504_vm1, %v1030_v38, 0.0  ;;  %v1033_v26 = vmul.f32 %v2385_v21, %v2822_v28  ;;  %v1112_v59 = vadd.s32 4294967288, %v1107_v56 }
 0x128   : > { %2398 = vtanh.f32 %v999_v18  ;;  %v2387_v23 = vpop.eup %2386  ;;  %1059 = vadd.xlane.f32.xlu0 %v1058_v22 }
 0x129   : > { %v1032_v24 = vmul.f32 %v2387_v23, %v2822_v28  ;;  %v1067_v32 = vsel %vm504_vm1, %v1033_v26, 0.0  ;;  %v1088_v26 = vld [vmem:[%s476_s24] sm:$0xff] }
 0x12a   : > { %1062 = vadd.xlane.f32.xlu1 %v1061_v25  ;;  %vm1089_vm11 = vcmp.eq.s32.totalorder %v1088_v26, 0 }
 0x12b   : > { %v2389_v27 = vpop.eup %2388  ;;  %v1064_v29 = vsel %vm504_vm1, %v1032_v24, 0.0 }
 0x12c   : > { %1065 = vadd.xlane.f32.xlu0 %v1064_v29  ;;  %v1035_v33 = vmul.f32 %v2389_v27, %v2822_v28 }
 0x12d   : > { %v2391_v30 = vpop.eup %2390 }
 0x12e   : > { %v1034_v31 = vmul.f32 %v2391_v30, %v2822_v28  ;;  %1068 = vadd.xlane.f32.xlu1 %v1067_v32  ;;  %v1073_v39 = vsel %vm504_vm1, %v1035_v33, 0.0 }
 0x12f   : > { %v2393_v34 = vpop.eup %2392 }
 0x130   : > { %v1070_v35 = vsel %vm504_vm1, %v1034_v31, 0.0  ;;  %v1037_v40 = vmul.f32 %v2393_v34, %v2822_v28 }
 0x131   : > { %v2395_v36 = vpop.eup %2394  ;;  %1071 = vadd.xlane.f32.xlu0 %v1070_v35 }
 0x132   : > { %v1036_v37 = vmul.f32 %v2395_v36, %v2822_v28  ;;  %1074 = vadd.xlane.f32.xlu1 %v1073_v39  ;;  %v1079_v45 = vsel %vm504_vm1, %v1037_v40, 0.0 }
 0x133   : > { %v2397_v41 = vpop.eup %2396 }
 0x134   : > { %v1076_v42 = vsel %vm504_vm1, %v1036_v37, 0.0  ;;  %v1039_v46 = vmul.f32 %v2397_v41, %v2822_v28  ;;  %v1261_v41 = vld [vmem:[%s2692_s11 + $0x8] sm:$0xff] }
 0x135   : > { %v2399_v43 = vpop.eup %2398  ;;  %1077 = vadd.xlane.f32.xlu0 %v1076_v42  ;;  %v1265_v42 = vld [vmem:[%s2692_s11 + $0x28] sm:$0xff] }
 0x136   : > { %v1038_v44 = vmul.f32 %v2399_v43, %v2822_v28  ;;  %1080 = vadd.xlane.f32.xlu1 %v1079_v45  ;;  %v1085_v48 = vsel %vm504_vm1, %v1039_v46, 0.0  ;;  %v2866_v28 = vshrl.u32 %v1106_v53, 7  ;;  %v2531_v43 = vmov 0.0  }
 0x137   : > { %2256 = vmatprep.subr.mxu1 %v2531_v43  ;;  %2270 = vmatprep.subr.mxu0 %v2531_v43 }
 0x138   : > { %v1082_v47 = vsel %vm504_vm1, %v1038_v44, 0.0  ;;  %v1110_v62 = vsub.s32 %v1107_v56, %v2866_v28  ;;  %v1115_v63 = vsub.s32 %v1112_v59, %v2866_v28  ;;  %2257 = vmatpush3.msra.mxu1 %v1261_v41  ;;  %2271 = vmatpush3.msra.mxu0 %v1265_v42 }
 0x139   : > { %1083 = vadd.xlane.f32.xlu0 %v1082_v47  ;;  %2258 = vmatprep.subr.mxu1 %v2531_v43 }
 0x13a   : > { %1086 = vadd.xlane.f32.xlu1 %v1085_v48  ;;  %2272 = vmatprep.subr.mxu0 %v2531_v43 }
 0x13b   : > { %2260 = vmatprep.mubr.msk.f32.mxu1 %vm2532_vm13, %v2531_v43  ;;  %2274 = vmatprep.mubr.msk.f32.mxu0 %vm2532_vm13, %v2531_v43 }
 0x1a3   : > { %v1045_v49 = vpop.xlane.xlu0 %1044 }
 0x1a4   : > { %v1116_v10 = vrot.slane %v1045_v49, %v1115_v63  ;;  %v1260_v49 = vld [vmem:[%s2692_s11] sm:$0xff] }
 0x1a5   : > { %2259 = vmatpush3.msra.mxu1 %v1260_v49 }
 0x1a6   : > { %2263 = vmatprep.subr.mxu1 %v2531_v43 }
 0x1a7   : > { %v1051_v50 = vpop.xlane.xlu1 %1050  ;;  %v1042_v51 = vpop.xlane.xlu0 %1041 }
 0x1a8   : > { %v1126_v4 = vrot.slane %v1051_v50, %v1115_v63  ;;  %v1111_v5 = vrot.slane %v1042_v51, %v1110_v62  ;;  %v1264_v50 = vld [vmem:[%s2692_s11 + $0x20] sm:$0xff] }
 0x1a9   : > { %2273 = vmatpush3.msra.mxu0 %v1264_v50 }
 0x1aa   : > { %v1118_v17 = vsel %vm1117_vm3, %v1116_v10, %v1111_v5  ;;  %2284 = vmatprep.subr.mxu0 %v2531_v43  ;;  %v1266_v5 = vld [vmem:[%s2692_s11 + $0x30] sm:$0xff]  ;;  %v1272_v10 = vld [vmem:[%s2692_s11 + $0x60] sm:$0xff] }
 0x1ab   : > { %v1048_v52 = vpop.xlane.xlu1 %1047 }
 0x1ac   : > { %v1122_v1 = vrot.slane %v1048_v52, %v1110_v62  ;;  %v2533_v52 = vmov 1966171168  }
 0x1ad   : > { %v1054_v54 = vpop.xlane.xlu0 %1053  ;;  %v1213_v53 = vunpack.c.l.s4 %v2533_v52 }
 0x1ae   : > { %v1131_v7 = vrot.slane %v1054_v54, %v1110_v62  ;;  %v1127_v11 = vsel %vm1117_vm3, %v1126_v4, %v1122_v1  ;;  %v1268_v4 = vld [vmem:[%s2692_s11 + $0x40] sm:$0xff] }
 0x1af   : > { %v1057_v55 = vpop.xlane.xlu1 %1056  ;;  %v1183_v20 = vsel %vm1182_vm4, %v1127_v11, %v1118_v17  ;;  %v1214_v54 = vunpack.c.0.s8 %v1213_v53 }
 0x1b0   : > { %v1135_v2 = vrot.slane %v1057_v55, %v1115_v63 }
 0x1b1   : > { %v1060_v57 = vpop.xlane.xlu0 %1059  ;;  %v1217_v55 = vsub.s32 %v1214_v54, %v2866_v28 }
 0x1b2   : > { %v1140_v12 = vrot.slane %v1060_v57, %v1110_v62  ;;  %v1136_v14 = vsel %vm1117_vm3, %v1135_v2, %v1131_v7  ;;  %v1267_v2 = vld [vmem:[%s2692_s11 + $0x38] sm:$0xff]  ;;  %v1273_v7 = vld [vmem:[%s2692_s11 + $0x68] sm:$0xff] }
 0x1b3   : > { %v1063_v58 = vpop.xlane.xlu1 %1062  ;;  %v1185_v24 = vsel %vm1184_vm5, %v1136_v14, %v1183_v20 }
 0x1b4   : > { %v1144_v6 = vrot.slane %v1063_v58, %v1115_v63 }
 0x1b5   : > { %v1066_v60 = vpop.xlane.xlu0 %1065 }
 0x1b6   : > { %v1149_v15 = vrot.slane %v1066_v60, %v1110_v62  ;;  %v1145_v18 = vsel %vm1117_vm3, %v1144_v6, %v1140_v12  ;;  %v1263_v60 = vld [vmem:[%s2692_s11 + $0x18] sm:$0xff]  ;;  %v1270_v12 = vld [vmem:[%s2692_s11 + $0x50] sm:$0xff] }
 0x1b7   : > { %v1069_v61 = vpop.xlane.xlu1 %1068  ;;  %v1187_v27 = vsel %vm1186_vm6, %v1145_v18, %v1185_v24 }
 0x1b8   : > { %v1153_v8 = vrot.slane %v1069_v61, %v1115_v63 }
 0x1ba   : > { %v1072_v0 = vpop.xlane.xlu0 %1071  ;;  %v1154_v21 = vsel %vm1117_vm3, %v1153_v8, %v1149_v15  ;;  %v1275_v15 = vld [vmem:[%s2692_s11 + $0x78] sm:$0xff] }
 0x1bb   : > { %v1075_v3 = vpop.xlane.xlu1 %1074  ;;  %v1158_v38 = vrot.slane %v1072_v0, %v1110_v62  ;;  %v1189_v31 = vsel %vm1188_vm7, %v1154_v21, %v1187_v27  ;;  %v1269_v0 = vld [vmem:[%s2692_s11 + $0x48] sm:$0xff] }
 0x1bc   : > { %v1162_v13 = vrot.slane %v1075_v3, %v1115_v63 }
 0x1be   : > { %v1078_v9 = vpop.xlane.xlu0 %1077  ;;  %v1163_v25 = vsel %vm1117_vm3, %v1162_v13, %v1158_v38 }
 0x1bf   : > { %v1081_v16 = vpop.xlane.xlu1 %1080  ;;  %v1167_v22 = vrot.slane %v1078_v9, %v1110_v62  ;;  %v1191_v34 = vsel %vm1190_vm8, %v1163_v25, %v1189_v31  ;;  %v1271_v9 = vld [vmem:[%s2692_s11 + $0x58] sm:$0xff] }
 0x1c0   : > { %v1171_v19 = vrot.slane %v1081_v16, %v1115_v63  ;;  %v1274_v16 = vld [vmem:[%s2692_s11 + $0x70] sm:$0xff] }
 0x1c2   : > { %v1084_v23 = vpop.xlane.xlu0 %1083  ;;  %v1172_v29 = vsel %vm1117_vm3, %v1171_v19, %v1167_v22 }
 0x1c3   : > { %v1087_v30 = vpop.xlane.xlu1 %1086  ;;  %v1176_v32 = vrot.slane %v1084_v23, %v1110_v62  ;;  %v1193_v36 = vsel %vm1192_vm9, %v1172_v29, %v1191_v34 }
 0x1c4   : > { %v1180_v33 = vrot.slane %v1087_v30, %v1115_v63  ;;  %v1262_v63 = vld [vmem:[%s2692_s11 + $0x10] sm:$0xff]  ;;  %s2432_s11 = scalar_lea.vmem %s1911_s27, 128 }
 0x1c5   : > { %p2433_p13 = scmp.ne.s32.totalorder %s1911_s27, %s2432_s11  ;;  %p2440_p10 = scmp.lt.s32.totalorder %s2438_s28, %s2432_s11 }
 0x1c6   : > { %v1181_v35 = vsel %vm1117_vm3, %v1180_v33, %v1176_v32 }
 0x1c7   : > { %v1195_v37 = vsel %vm1194_vm10, %v1181_v35, %v1193_v36  ;;  %p2434_p5 = pnand %p2433_p13, %p3053_p4  ;;  %p2441_p0 = por %p2440_p10, %p2439_p8 }
 0x1c8   : > { %v1197_v39 = vsel %vm1089_vm11, -3.4028235e+38, %v1195_v37 }
 0x1c9   : > { %v1199_v40 = vsel %vm1198_vm12, %v1197_v39, -inf  ;;  %p2435_p7 = pneg %p2434_p5 }
 0x1ca   : > { %1200 = vmax.xlane.f32.xlu0 %v1199_v40 }
 0x1cb   : > { %p2442_p2 = pnand %p2441_p0, %p2435_p7 }
 0x253   : > { %v1201_v44 = vpop.xlane.xlu0 %1200 }
 0x254   : > { %v1202_v45 = vsub.f32 %v1197_v39, %v1201_v44 }
 0x256   : > { %v1203_v46 = vmul.f32 1.442695, %v1202_v45 }
 0x258   : > { %2400 = vpow2.f32 %v1203_v46 }
 0x265   : > { %v2401_v47 = vpop.eup %2400 }
 0x266   : > { %v1205_v48 = vsel %vm1198_vm12, %v2401_v47, 0.0 }
 0x267   : > { %1206 = vadd.xlane.f32.xlu1 %v1205_v48 }
 0x2f0   : > { %v1207_v51 = vpop.xlane.xlu1 %1206 }
 0x2f1   : > { %2402 = vrcp.f32 %v1207_v51 }
 0x2fe   : > { %v2403_v56 = vpop.eup %2402 }
 0x2ff   : > { %v1209_v57 = vmul.f32 %v2403_v56, %v2401_v47 }
 0x301   : > { %v1218_v58 = vrot.slane %v1209_v57, %v1217_v55  ;;  %1852 = vst.msk [vmem:[%s2909_s29] sm:$0xff] %vm1198_vm12, %v1209_v57  ;;  %v1211_v62 = vcombine.high %v1209_v57, %v1209_v57 }
 0x303   : > { %v1234_v59 = vrot.slane %v1218_v58, %v1217_v55  ;;  %v1226_v61 = vcombine.high %v1218_v58, %v1218_v58  ;;  %v1225_v3 = vrot.slane %v1211_v62, %v1217_v55 }
 0x305   : > { %2261 = vmatmul.mubr.msk.f32.vlgmr.msra.gmra.mxu1 %vm1198_vm12, %v1234_v59  ;;  %v1256_v28 = vcombine.high %v1234_v59, %v1234_v59  ;;  %v1248_v1 = vrot.slane %v1226_v61, %v1217_v55  ;;  %v1241_v6 = vrot.slane %v1225_v3, %v1217_v55  ;;  %v1227_v11 = vcombine.high %v1225_v3, %v1225_v3 }
 0x306   : > { %2264 = vmatpush3.msra.mxu1 %v1263_v60  ;;  %2267 = vmatprep.mubr.msk.f32.mxu1 %vm2532_vm13, %v2531_v43 }
 0x307   : > { %2265 = vmatprep.subr.mxu1 %v2531_v43  ;;  %2275 = vmatmul.mubr.msk.f32.vlgmr.msra.gmra.mxu0 %vm1198_vm12, %v1256_v28  ;;  %v1258_v8 = vcombine.high %v1248_v1, %v1248_v1  ;;  %v1257_v13 = vcombine.high %v1241_v6, %v1241_v6  ;;  %v1255_v14 = vrot.slane %v1227_v11, %v1217_v55 }
 0x308   : > { %2266 = vmatpush3.msra.mxu1 %v1262_v63  ;;  %2285 = vmatpush3.msra.mxu0 %v1269_v0 }
 0x309   : > { %2277 = vmatprep.subr.mxu1 %v2531_v43  ;;  %2268 = vmatmul.mubr.msk.f32.vlgmr.msra.gmra.mxu1 %vm1198_vm12, %v1248_v1  ;;  %v1259_v17 = vcombine.high %v1255_v14, %v1255_v14 }
 0x30a   : > { %2278 = vmatpush3.msra.mxu1 %v1267_v2  ;;  %2286 = vmatprep.subr.mxu0 %v2531_v43 }
 0x30b   : > { %2279 = vmatprep.subr.mxu1 %v2531_v43  ;;  %2287 = vmatpush3.msra.mxu0 %v1268_v4 }
 0x30c   : > { %2288 = vmatprep.mubr.msk.f32.mxu0 %vm2532_vm13, %v2531_v43  ;;  %2280 = vmatpush3.msra.mxu1 %v1266_v5 }
 0x30d   : > { %2289 = vmatmul.mubr.msk.f32.vlgmr.msra.gmra.mxu0 %vm1198_vm12, %v1241_v6  ;;  %2298 = vmatprep.subr.mxu0 %v2531_v43 }
 0x30e   : > { %2281 = vmatprep.mubr.msk.f32.mxu1 %vm2532_vm13, %v2531_v43  ;;  %2291 = vmatprep.subr.mxu1 %v2531_v43 }
 0x30f   : > { %2299 = vmatpush3.msra.mxu0 %v1273_v7  ;;  %2282 = vmatmul.mubr.msk.f32.vlgmr.msra.gmra.mxu1 %vm1198_vm12, %v1258_v8 }
 0x310   : > { %2292 = vmatpush3.msra.mxu1 %v1271_v9  ;;  %2300 = vmatprep.subr.mxu0 %v2531_v43 }
 0x311   : > { %2293 = vmatprep.subr.mxu1 %v2531_v43  ;;  %2301 = vmatpush3.msra.mxu0 %v1272_v10 }
 0x312   : > { %2302 = vmatprep.mubr.msk.f32.mxu0 %vm2532_vm13, %v2531_v43  ;;  %2294 = vmatpush3.msra.mxu1 %v1270_v12 }
 0x313   : > { %2303 = vmatmul.mubr.msk.f32.vlgmr.msra.gmra.mxu0 %vm1198_vm12, %v1257_v13  ;;  %2295 = vmatprep.mubr.msk.f32.mxu1 %vm2532_vm13, %v2531_v43 }
 0x314   : > { %2305 = vmatprep.subr.mxu1 %v2531_v43  ;;  %2296 = vmatmul.mubr.msk.f32.vlgmr.msra.gmra.mxu1 %vm1198_vm12, %v1255_v14 }
 0x315   : > { %2306 = vmatpush3.msra.mxu1 %v1275_v15  ;;  %2309 = vmatprep.mubr.msk.f32.mxu1 %vm2532_vm13, %v2531_v43 }
 0x316   : > { %2307 = vmatprep.subr.mxu1 %v2531_v43 }
 0x317   : > { %2308 = vmatpush3.msra.mxu1 %v1274_v16 }
 0x318   : > { %2310 = vmatmul.mubr.msk.f32.vlgmr.msra.gmra.mxu1 %vm1198_vm12, %v1259_v17 }
 0x319   : > { %2445 = shalt.err (!%p2442_p2)
}
 0x31a   : > { %s2446_s24 = scalar_lea.hbm %s1908_s22, 128  ;;  %s2450_s21 = scalar_lea.hbm %s3036_s10, 256 }
 0x31b   : > { %p2447_p9 = scmp.ne.s32.totalorder %s1908_s22, %s2446_s24  ;;  %p2451_p6 = scmp.lt.s32.totalorder %s1908_s22, %s3036_s10 }
 0x31c   : > { %p2452_p11 = scmp.lt.s32.totalorder %s2450_s21, %s2446_s24 }
 0x31d   : > { %p2448_p1 = pnand %p2447_p9, %p3053_p4 }
 0x31e   : > { %p2453_p12 = por %p2452_p11, %p2451_p6 }
 0x31f   : > { %p2449_p3 = pneg %p2448_p1 }
 0x321   : > { %p2454_p13 = pnand %p2453_p12, %p2449_p3 }
 0x323   : > { %2457 = shalt.err (!%p2454_p13)
}
 0x324   : > { %2315 = dma.vmem_to_hbm [thread:$0]  (%p3053_p4), %s1911_s27, 128, %s1908_s22, %s1884_s15   ;;  %vm1876_vm14 = vcmask 195584  }
 0x325   : > { %s3054_s30 = sshll.u32 %s2688_s19, 3  ;;  %s3055_s27 = sshll.u32 %s2612_s17, 7 }
 0x326   : > { %s445_s23 = scalar_lea.vmem [#allocation5], %s3054_s30  ;;  %s2988_s12 = scalar_lea.hbm %s3035_s9, %s3055_s27 }
 0x327   : > { %s1897_s22 = sshll.u32 %s445_s23, 4  ;;  %s1879_s18 = scalar_lea.sflag [#allocation4], %s2688_s19  ;;  %s1898_s22 = int_to_ptr.vmem [resolvable:$true] %s1897_s22 }
 0x328   : > { %s2458_s28 = scalar_lea.vmem %s1898_s22, 128  ;;  %s2535_s24 = smov [#allocation5]  }
 0x329   : > { %p2459_p5 = scmp.ne.s32.totalorder %s1898_s22, %s2458_s28  ;;  %s2462_s29 = sshll.u32 %s2535_s24, 4  ;;  %s2463_s29 = int_to_ptr.vmem [resolvable:$false] %s2462_s29 }
 0x32a   : > { %s2464_s20 = scalar_lea.vmem %s2463_s29, 256  ;;  %p2465_p10 = scmp.lt.s32.totalorder %s1898_s22, %s2463_s29 }
 0x32b   : > { %p2460_p7 = pnand %p2459_p5, %p3053_p4  ;;  %p2466_p0 = scmp.lt.s32.totalorder %s2464_s20, %s2458_s28 }
 0x32d   : > { %p2461_p8 = pneg %p2460_p7  ;;  %p2467_p2 = por %p2466_p0, %p2465_p10 }
 0x32f   : > { %p2468_p9 = pnand %p2467_p2, %p2461_p8 }
 0x3c5   : > { %v1344_v18 = vpop.f32.mrf.mxu1 }
 0x3c7   : > { %v2262_v38 = vpop.f32.mrf.mxu1  ;;  %v1488_v19 = vpop.f32.mrf.mxu0 }
 0x3c8   : > { %v1863_v29 = vrot.slane %v1488_v19, 6 }
 0x3c9   : > { %v1416_v20 = vpop.f32.mrf.mxu1  ;;  %v2276_v21 = vpop.f32.mrf.mxu0 }
 0x3ca   : > { %v1861_v22 = vrot.slane %v1416_v20, 7 }
 0x3cb   : > { %v2269_v23 = vpop.f32.mrf.mxu1 }
 0x3cc   : > { %v1862_v25 = vsel %vm1182_vm4, %v1861_v22, %v1344_v18 }
 0x3cd   : > { %v1632_v24 = vpop.f32.mrf.mxu0  ;;  %v1864_v32 = vsel %vm1184_vm5, %v1863_v29, %v1862_v25 }
 0x3ce   : > { %v1867_v35 = vrot.slane %v1632_v24, 4 }
 0x3cf   : > { %v1560_v26 = vpop.f32.mrf.mxu1  ;;  %v2290_v27 = vpop.f32.mrf.mxu0 }
 0x3d0   : > { %v1865_v30 = vrot.slane %v1560_v26, 5 }
 0x3d1   : > { %v2283_v31 = vpop.f32.mrf.mxu1 }
 0x3d2   : > { %v1866_v33 = vsel %vm1186_vm6, %v1865_v30, %v1864_v32 }
 0x3d3   : > { %v1776_v34 = vpop.f32.mrf.mxu0  ;;  %v1868_v40 = vsel %vm1188_vm7, %v1867_v35, %v1866_v33 }
 0x3d4   : > { %v1704_v36 = vpop.f32.mrf.mxu1  ;;  %v1871_v43 = vrot.slane %v1776_v34, 2 }
 0x3d5   : > { %v1869_v37 = vrot.slane %v1704_v36, 3  ;;  %v2304_v39 = vpop.f32.mrf.mxu0 }
 0x3d6   : > { %v2297_v41 = vpop.f32.mrf.mxu1 }
 0x3d7   : > { %v1870_v42 = vsel %vm1190_vm8, %v1869_v37, %v1868_v40 }
 0x3d8   : > { %v1848_v44 = vpop.f32.mrf.mxu1  ;;  %v1872_v46 = vsel %vm1192_vm9, %v1871_v43, %v1870_v42 }
 0x3d9   : > { %v1873_v45 = vrot.slane %v1848_v44, 1 }
 0x3da   : > { %v2311_v47 = vpop.f32.mrf.mxu1 }
 0x3db   : > { %v1874_v48 = vsel %vm1194_vm10, %v1873_v45, %v1872_v46 }
 0x3dc   : > { %1877 = vst.msk [vmem:[%s445_s23] sm:$0xff] %vm1876_vm14, %v1874_v48 }
 0x3dd   : > { %2471 = shalt.err (!%p2468_p9)
}
 0x3de   : > { %s2472_s17 = scalar_lea.hbm %s2988_s12, 128  ;;  %s2476_s30 = scalar_lea.hbm %s3035_s9, 256 }
 0x3df   : > { %p2473_p1 = scmp.ne.s32.totalorder %s2988_s12, %s2472_s17  ;;  %p2477_p11 = scmp.lt.s32.totalorder %s2988_s12, %s3035_s9 }
 0x3e0   : > { %p2478_p12 = scmp.lt.s32.totalorder %s2476_s30, %s2472_s17 }
 0x3e1   : > { %p2474_p3 = pnand %p2473_p1, %p3053_p4 }
 0x3e2   : > { %p2479_p13 = por %p2478_p12, %p2477_p11 }
 0x3e3   : > { %p2475_p6 = pneg %p2474_p3 }
 0x3e5   : > { %p2480_p5 = pnand %p2479_p13, %p2475_p6 }
 0x3e7   : > { %2483 = shalt.err (!%p2480_p5)
}
 0x3e8   : > { %2314 = dma.vmem_to_hbm [thread:$0]  (%p3053_p4), %s1898_s22, 128, %s2988_s12, %s1879_s18  }
 0x3e9 PF: > { %s1922_s15 = sand.u32 1, %s2514_s13   ;;  %p3056_p7 = scmp.ne.s32.totalorder %s3050_s26, 0 }
 0x3ea   : > { %p3057_p8 = scmp.ge.s32.totalorder %s2526_s16, 2  ;;  %s1923_s11 = scalar_lea.sflag [#allocation4], %s1922_s15 }
 0x3ec   : > { %p2323_p10 = pnand %p3057_p8, %p3056_p7 }
 0x3ee   : > { %p2324_p0 = pneg %p2323_p10 }
 0x3f0   : > { %2505 = dma.done.wait (%p2324_p0), %s1923_s11, 128  }
 0x3f1   : > { %2507 = vsyncadd (%p2324_p0), %s1923_s11, 4294967168  ;;  %s1932_s28 = scalar_lea.sflag [#allocation7], %s1922_s15 }
 0x3f2   : > { %2509 = dma.done.wait (%p2324_p0), %s1932_s28, 128  }
 0x3f3   : > { %2511 = vsyncadd (%p2324_p0), %s1932_s28, 4294967168  ;;  %s3058_s16 = sld [smem:[#allocation12_spill]]  ;;  %s3061_s13 = smov %s2518_s14 }
 0x3f4   : > { %s3059_s25 = sld [smem:[#allocation11_spill]] }
 0x3f5   : > { %s3060_s15 = sld [smem:[#allocation13_spill]] }
 0x3f9   : > { %p27_p4 = scmp.ge.s32.totalorder %s3058_s16, 4  }
 0x3fa   : > { %s3062_s14 = smov %s3059_s25 }
 0x3fb   :  { %29 = sbr.rel (!%p27_p4) target bundleno = 7 (0x7), region = 130 }
 0x400   :  { %1937 = vsyncpa [#allocation3], 1 }
 0x401   :  { %1939 = vsyncpa [#allocation3 + $0x1], 1 }
 0x402   :  { %1940 = vsyncpa [#allocation4], 1 }
 0x403   :  { %1942 = vsyncpa [#allocation4 + $0x1], 1 }
 0x404   :  { %1943 = vsyncpa [#allocation7], 1 }
 0x405   :  { %1945 = vsyncpa [#allocation7 + $0x1], 1 }

</bundles_post_ra>
